<compile_context>
chip_gen: v6e
topology: v6e:2x2x1
jax: 0.10.0
libtpu: 0.0.40
codegen_flags: <defaults>
</compile_context>

<pallas_src>
import jax
import jax.numpy as jnp
from jax.experimental import pallas as pl
from jax.experimental.pallas import tpu as pltpu


def _round_up(a, b):
    return (a + b - 1) // b * b


# ----------------------------------------------------------------------------- kernel
def _make_vq_kernel(tile_n, k_bins, n_valid):
    k_bits = max(1, (k_bins - 1).bit_length())
    assert k_bits <= 16, "index-in-mantissa packing assumes k_bins <= 65536"
    idx_mask = (1 << k_bits) - 1
    hi_mask = ~idx_mask  # clears the low index bits (two's-complement safe)

    def kernel(x_ref, nk_ref, kthi_ref, ktlo_ref, ksq_ref, xl_ref, xd_ref, part_ref):
        i = pl.program_id(0)
        x = x_ref[...]                                        # (D, TN) f32, tokens on lanes

        # --- distance core on the MXU (bf16 inputs, f32 accumulate) -------------
        # dist = |k|^2 + (-2k)·x ; the per-token |x|^2 term is argmin-invariant and
        # the losses use the exact f32 diff to the *selected* code below.
        xk = jnp.dot(nk_ref[...], x.astype(jnp.bfloat16),
                     preferred_element_type=jnp.float32)      # (K, TN)
        dist = xk + ksq_ref[...]                              # (K,1) broadcast over lanes

        # --- fused (min, argmin): ONE cross-sublane reduction --------------------
        # order-preserving f32 -> int32 key, code index packed into the low bits;
        # jnp.min yields the nearest code with first-index tie-break directly in a
        # lane-dense (1, TN) layout (no transpose / relayout needed for x_l).
        bits = pltpu.bitcast(dist, jnp.int32)
        skey = jnp.where(bits >= 0, bits, bits ^ 0x7FFFFFFF)  # monotone total order
        code = jax.lax.broadcasted_iota(jnp.int32, dist.shape, 0)
        key = (skey & hi_mask) | code
        kmin = jnp.min(key, axis=0, keepdims=True)            # (1, TN) single reduce
        idx = kmin & idx_mask                                  # (1, TN) int32 in [0, K)
        xl_ref[...] = idx

        # --- dequantise on the bf16 MXU fast path -------------------------------
        # onehot values are exactly 0/1; codebook passed as a hoisted hi/lo bf16
        # pair so x_d ~= k[idx] to ~2^-18 relative, accumulated in f32.
        onehot = jnp.where(code == idx, 1.0, 0.0).astype(jnp.bfloat16)   # (K, TN)
        x_d = (jnp.dot(kthi_ref[...], onehot, preferred_element_type=jnp.float32)
               + jnp.dot(ktlo_ref[...], onehot, preferred_element_type=jnp.float32))
        xd_ref[...] = x_d.astype(xd_ref.dtype)                # (D, TN) lane-dense store

        # --- fused per-block partial reductions (single lane-dense vector) ------
        lane = jax.lax.broadcasted_iota(jnp.int32, (1, tile_n), 1)
        valid = (i * tile_n + lane) < n_valid                 # mask padded tail tokens
        diff = jnp.where(valid, x_d - x, 0.0)
        sel_sum = jnp.sum(diff * diff)        # sum_i |x_i - k_sel(i)|^2  (exact f32)
        sum_x = jnp.sum(x)                    # padded columns are zero
        sum_x2 = jnp.sum(x * x)               # for prenorm
        plane = jax.lax.broadcasted_iota(jnp.int32, (1, 128), 1)
        pvec = (jnp.where(plane == 0, sel_sum, 0.0)
                + jnp.where(plane == 1, sum_x, 0.0)
                + jnp.where(plane == 2, sum_x2, 0.0))
        part_ref[...] = pvec.reshape(part_ref.shape)

    return kernel


# ----------------------------------------------------------------------------- tiling
def _vmem_estimate(tile_n, d, k):
    io = 2 * 2 * d * tile_n * 4              # x^T in + x_d^T out, double-buffered
    io += 2 * (tile_n * 4 + 128 * 4)         # x_l + partials, double-buffered
    resident = k * d * 2 + 2 * d * k * 2 + k * 128 * 4
    interm = 4 * k * tile_n * 4              # dist / key / onehot live intermediates
    return io + resident + interm


def _vmem_limit_bytes(tile_n, d, k):
    est = _vmem_estimate(tile_n, d, k)
    # generous headroom, but stay inside v7x's 64 MiB physical / 32 MiB scoped VMEM
    return int(min(28 * 2**20, max(16 * 2**20, 2 * est)))


def _choose_tile_n(nf, tile_n, d, k, budget=20 * 2**20):
    if nf <= 128:
        t = 128
    else:
        # aim for >= 2 grid blocks (v7x has 2 TensorCores; grid axis is "parallel")
        t = min(_round_up(tile_n, 256), _round_up((nf + 1) // 2, 128))
        t = max(t, 128)
    # keep the per-step VMEM footprint within budget (matters for large k_bins)
    while t > 128 and _vmem_estimate(t, d, k) > budget:
        t -= 128
    return t
    # TODO(synk): for jukebox-scale codebooks (k_bins ~ 2048) an inner K-chunk
    # online-argmin loop would let tile_n stay large instead of shrinking here.


# ----------------------------------------------------------------------------- wrapper
def vq_pallas(x_flat, neg2k_bf16, kt_hi, kt_lo, ksq_col, *, tile_n=1024):
    """Returns (x_l (Nf,) i32, xd_q (Nf, D) f32, sel_sum, sum_x, sum_x2)."""
    nf, d = x_flat.shape
    k = neg2k_bf16.shape[0]

    tile_n = _choose_tile_n(nf, tile_n, d, k)
    nf_pad = _round_up(nf, tile_n)
    nb = nf_pad // tile_n

    # tokens on the lane axis inside the kernel (fully lane-dense I/O, transpose-free
    # lane-dense x_l); the wrapper-side transposes are cheap XLA glue.
    x_t = x_flat.T
    if nf_pad != nf:
        x_t = jnp.pad(x_t, ((0, 0), (0, nf_pad - nf)))

    kernel = _make_vq_kernel(tile_n, k, nf)
    grid_spec = pltpu.PrefetchScalarGridSpec(
        num_scalar_prefetch=0,
        grid=(nb,),
        in_specs=[
            pl.BlockSpec((d, tile_n), lambda i: (0, i)),     # x^T tile (tokens on lanes)
            pl.BlockSpec((k, d), lambda i: (0, 0)),          # -2k, bf16 (resident)
            pl.BlockSpec((d, k), lambda i: (0, 0)),          # k^T hi, bf16 (resident)
            pl.BlockSpec((d, k), lambda i: (0, 0)),          # k^T lo, bf16 (resident)
            pl.BlockSpec((k, 1), lambda i: (0, 0)),          # |k|^2 column (resident)
        ],
        out_specs=[
            pl.BlockSpec((1, tile_n), lambda i: (0, i)),     # x_l, lane-dense
            pl.BlockSpec((d, tile_n), lambda i: (0, i)),     # x_d^T, lane-dense
            pl.BlockSpec((1, 1, 128), lambda i: (i, 0, 0)),  # per-block partials
        ],
    )
    out_shape = (
        jax.ShapeDtypeStruct((1, nf_pad), jnp.int32),
        jax.ShapeDtypeStruct((d, nf_pad), jnp.float32),
        jax.ShapeDtypeStruct((nb, 1, 128), jnp.float32),
    )
    xl, xdt, parts = pl.pallas_call(
        kernel,
        out_shape=out_shape,
        grid_spec=grid_spec,
        compiler_params=pltpu.CompilerParams(
            dimension_semantics=("parallel",),               # no carried state
            vmem_limit_bytes=_vmem_limit_bytes(tile_n, d, k)),
    )(x_t, neg2k_bf16, kt_hi, kt_lo, ksq_col)

    x_l = xl[0, :nf]
    xd_q = xdt[:, :nf].T
    p = jnp.sum(parts.reshape(nb, 128), axis=0)
    return x_l, xd_q, p[0], p[1], p[2]


def vector_quantizer_forward(x, codebook, mu, *, tile_n=1024):
    """Replicates VectorQuantizer.forward(x, update_k=False).

    x: (N, T) with T == emb_width.  Returns (x_l, x_d, commit_loss, metrics)
    with x_l: (N,), x_d: (N, 1, emb_width), exactly as the PyTorch postprocess
    produces for this input shape.
    """
    N, T = x.shape
    K, D = codebook.shape
    assert T == D, "only the T == emb_width preprocess branch is implemented"
    # TODO(synk): the T == 2*emb_width preprocess branch (x = x1 + x2) is plain glue.

    x_flat = x.reshape(-1, T).astype(jnp.float32)
    nf = x_flat.shape[0]
    n_elem = nf * D

    # Hoisted per-codebook work (identical across every grid step).
    k_f32 = codebook.astype(jnp.float32)
    neg2k_bf16 = (-2.0 * k_f32).astype(jnp.bfloat16)          # -2 folded into the operand
    kt_f32 = k_f32.T
    kt_hi = kt_f32.astype(jnp.bfloat16)                       # dequant hi/lo bf16 pair
    kt_lo = (kt_f32 - kt_hi.astype(jnp.float32)).astype(jnp.bfloat16)
    ksq_col = jnp.sum(k_f32 * k_f32, axis=-1, keepdims=True)  # (K, 1) |k|^2

    x_l, xd_q, sel_sum, sum_x, sum_x2 = vq_pallas(
        x_flat, neg2k_bf16, kt_hi, kt_lo, ksq_col, tile_n=tile_n)

    fit = sel_sum / nf                       # mean squared distance to selected code
    commit_loss = sel_sum / n_elem           # == ||x_d.detach() - x||^2 / numel
    prenorm = (jnp.sqrt(jnp.maximum(sum_x2 - sum_x * sum_x / n_elem, 0.0))
               / jnp.sqrt(float(n_elem)))

    # straight-through estimator: forward value equals the dequantised codes
    x_d = x_flat + jax.lax.stop_gradient(xd_q - x_flat)
    # postprocess: view(N, T, -1).permute(0, 2, 1)
    x_d = x_d.reshape(N, T, -1).transpose(0, 2, 1)
    # TODO(synk): mu / init_k / update_k are training-time EMA buffer mutations with
    # host-side RNG; the codebook is treated as pre-initialized (update_k=False path).
    return x_l, x_d, commit_loss, dict(fit=fit, pn=prenorm)


if __name__ == "__main__":
    k_bins, emb_width, mu = 128, 64, 0.99
    N = 32  # forward input x has shape (N, T) with T == emb_width

    key = jax.random.PRNGKey(0)
    kx, kk = jax.random.split(key)
    x = jax.random.normal(kx, (N, emb_width), dtype=jnp.float32)
    codebook = 0.5 * jax.random.normal(kk, (k_bins, emb_width), dtype=jnp.float32)

    x_l, x_d, commit_loss, metrics = vector_quantizer_forward(x, codebook, mu)
    jax.block_until_ready((x_l, x_d, commit_loss, metrics))

    # ---- reference check in plain JAX -------------------------------------
    k_w = codebook.T
    dist = (jnp.sum(x * x, -1, keepdims=True)
            - 2.0 * jnp.dot(x, k_w, precision=jax.lax.Precision.HIGHEST)
            + jnp.sum(k_w * k_w, 0, keepdims=True))
    min_d_ref = jnp.min(dist, axis=-1)
    fit_ref = jnp.mean(min_d_ref)
    pn_ref = jnp.linalg.norm(x - jnp.mean(x)) / jnp.sqrt(float(N * emb_width))

    assert bool(jnp.all((x_l >= 0) & (x_l < k_bins)))
    # bf16 distance matmul (and the low-mantissa index packing) may flip near-ties,
    # but the selected code must still be a (near-)argmin of the true f32 distances.
    sel_d = dist[jnp.arange(N), x_l]
    assert bool(jnp.all(sel_d - min_d_ref <= 1e-2 * (1.0 + jnp.abs(min_d_ref))))

    # dequantised output must match an embedding lookup of the chosen codes
    # (hi/lo bf16 split reproduces the f32 codebook to ~2^-18 relative)
    xd_expected = codebook[x_l].reshape(N, emb_width, -1).transpose(0, 2, 1)
    assert x_d.shape == (N, 1, emb_width)
    assert bool(jnp.allclose(x_d, xd_expected, atol=2e-5, rtol=2e-5))

    commit_ref = jnp.sum((codebook[x_l] - x) ** 2) / (N * emb_width)
    assert bool(jnp.allclose(commit_loss, commit_ref, atol=1e-4, rtol=1e-4))
    assert bool(jnp.allclose(metrics["fit"], fit_ref, atol=5e-2, rtol=1e-2))
    assert bool(jnp.allclose(metrics["pn"], pn_ref, atol=1e-5, rtol=1e-4))

    print("KERNEL_OK")
</pallas_src>

<mosaic_0001>
module attributes {stable_mosaic.version = 11 : i64} {
  func.func @kernel(%arg0: i32, %arg1: memref<64x128xf32, #tpu.memory_space<vmem>>, %arg2: memref<128x64xbf16, #tpu.memory_space<vmem>>, %arg3: memref<64x128xbf16, #tpu.memory_space<vmem>>, %arg4: memref<64x128xbf16, #tpu.memory_space<vmem>>, %arg5: memref<128x1xf32, #tpu.memory_space<vmem>>, %arg6: memref<1x128xi32, #tpu.memory_space<vmem>>, %arg7: memref<64x128xf32, #tpu.memory_space<vmem>>, %arg8: memref<1x1x128xf32, #tpu.memory_space<vmem>>) attributes {dimension_semantics = [#tpu.dimension_semantics<parallel>], iteration_bounds = array<i64: 1>, scalar_prefetch = 0 : i64, scratch_operands = 0 : i64, tpu.core_type = #tpu.core_type<tc>, window_params = [{transform_indices = @transform_0, window_bounds = array<i64: 64, 128>}, {pipeline_mode = #tpu.pipeline_mode<synchronous>, transform_indices = @transform_1, window_bounds = array<i64: 128, 64>}, {pipeline_mode = #tpu.pipeline_mode<synchronous>, transform_indices = @transform_2, window_bounds = array<i64: 64, 128>}, {pipeline_mode = #tpu.pipeline_mode<synchronous>, transform_indices = @transform_3, window_bounds = array<i64: 64, 128>}, {pipeline_mode = #tpu.pipeline_mode<synchronous>, transform_indices = @transform_4, window_bounds = array<i64: 128, 1>}, {transform_indices = @transform_5, window_bounds = array<i64: 1, 128>}, {transform_indices = @transform_6, window_bounds = array<i64: 64, 128>}, {transform_indices = @transform_7, window_bounds = array<i64: 1, 1, 128>}]} {
    %c0 = arith.constant 0 : index
    %c0_0 = arith.constant 0 : index
    %0 = vector.load %arg1[%c0, %c0_0] : memref<64x128xf32, #tpu.memory_space<vmem>>, vector<64x128xf32>
    %c0_1 = arith.constant 0 : index
    %c0_2 = arith.constant 0 : index
    %1 = vector.load %arg2[%c0_1, %c0_2] : memref<128x64xbf16, #tpu.memory_space<vmem>>, vector<128x64xbf16>
    %2 = arith.truncf %0 : vector<64x128xf32> to vector<64x128xbf16>
    %cst = arith.constant dense<0.000000e+00> : vector<128x128xf32>
    %3 = tpu.matmul %1, %2, %cst {dimension_numbers = #tpu.dot_dimension_numbers<[1], [0], [0], [1], [0, 0, 1, 1], [], []>} : vector<128x64xbf16>, vector<64x128xbf16>, vector<128x128xf32> -> vector<128x128xf32>
    %c0_3 = arith.constant 0 : index
    %c0_4 = arith.constant 0 : index
    %4 = vector.load %arg5[%c0_3, %c0_4] : memref<128x1xf32, #tpu.memory_space<vmem>>, vector<128x1xf32>
    %5 = vector.broadcast %4 : vector<128x1xf32> to vector<128x128xf32>
    %6 = arith.addf %3, %5 : vector<128x128xf32>
    %7 = tpu.bitcast %6 : vector<128x128xf32> -> vector<128x128xi32>
    %c0_i32 = arith.constant 0 : i32
    %8 = vector.broadcast %c0_i32 : i32 to vector<128x128xi32>
    %9 = arith.cmpi sge, %7, %8 : vector<128x128xi32>
    %c2147483647_i32 = arith.constant 2147483647 : i32
    %10 = vector.broadcast %c2147483647_i32 : i32 to vector<128x128xi32>
    %11 = arith.xori %7, %10 : vector<128x128xi32>
    %12 = arith.select %9, %7, %11 : vector<128x128xi1>, vector<128x128xi32>
    %13 = tpu.iota {dimensions = array<i32: 0>} : vector<128x128xi32>
    %c-128_i32 = arith.constant -128 : i32
    %14 = vector.broadcast %c-128_i32 : i32 to vector<128x128xi32>
    %15 = arith.andi %12, %14 : vector<128x128xi32>
    %16 = arith.ori %15, %13 : vector<128x128xi32>
    %cst_5 = arith.constant dense<2147483647> : vector<128xi32>
    %17 = vector.multi_reduction <minsi>, %16, %cst_5 [0] : vector<128x128xi32> to vector<128xi32>
    %18 = vector.shape_cast %17 : vector<128xi32> to vector<1x128xi32>
    %c127_i32 = arith.constant 127 : i32
    %19 = vector.broadcast %c127_i32 : i32 to vector<1x128xi32>
    %20 = arith.andi %18, %19 : vector<1x128xi32>
    %c0_6 = arith.constant 0 : index
    %c0_7 = arith.constant 0 : index
    %21 = vector.load %arg6[%c0_6, %c0_7] : memref<1x128xi32, #tpu.memory_space<vmem>>, vector<1x128xi32>
    tpu.vector_store %arg6[%c0_6, %c0_7], %20 {strides = array<i32>} : memref<1x128xi32, #tpu.memory_space<vmem>>, vector<1x128xi32>,
    %22 = vector.broadcast %20 : vector<1x128xi32> to vector<128x128xi32>
    %23 = arith.cmpi eq, %13, %22 : vector<128x128xi32>
    %cst_8 = arith.constant 1.000000e+00 : f32
    %cst_9 = arith.constant 0.000000e+00 : f32
    %24 = vector.broadcast %cst_8 : f32 to vector<128x128xf32>
    %25 = vector.broadcast %cst_9 : f32 to vector<128x128xf32>
    %26 = arith.select %23, %24, %25 : vector<128x128xi1>, vector<128x128xf32>
    %27 = arith.truncf %26 : vector<128x128xf32> to vector<128x128xbf16>
    %c0_10 = arith.constant 0 : index
    %c0_11 = arith.constant 0 : index
    %28 = vector.load %arg3[%c0_10, %c0_11] : memref<64x128xbf16, #tpu.memory_space<vmem>>, vector<64x128xbf16>
    %cst_12 = arith.constant dense<0.000000e+00> : vector<64x128xf32>
    %29 = tpu.matmul %28, %27, %cst_12 {dimension_numbers = #tpu.dot_dimension_numbers<[1], [0], [0], [1], [0, 0, 1, 1], [], []>} : vector<64x128xbf16>, vector<128x128xbf16>, vector<64x128xf32> -> vector<64x128xf32>
    %c0_13 = arith.constant 0 : index
    %c0_14 = arith.constant 0 : index
    %30 = vector.load %arg4[%c0_13, %c0_14] : memref<64x128xbf16, #tpu.memory_space<vmem>>, vector<64x128xbf16>
    %cst_15 = arith.constant dense<0.000000e+00> : vector<64x128xf32>
    %31 = tpu.matmul %30, %27, %cst_15 {dimension_numbers = #tpu.dot_dimension_numbers<[1], [0], [0], [1], [0, 0, 1, 1], [], []>} : vector<64x128xbf16>, vector<128x128xbf16>, vector<64x128xf32> -> vector<64x128xf32>
    %32 = arith.addf %29, %31 : vector<64x128xf32>
    %c0_16 = arith.constant 0 : index
    %c0_17 = arith.constant 0 : index
    %33 = vector.load %arg7[%c0_16, %c0_17] : memref<64x128xf32, #tpu.memory_space<vmem>>, vector<64x128xf32>
    tpu.vector_store %arg7[%c0_16, %c0_17], %32 {strides = array<i32>} : memref<64x128xf32, #tpu.memory_space<vmem>>, vector<64x128xf32>,
    %34 = tpu.iota {dimensions = array<i32: 1>} : vector<1x128xi32>
    %c128_i32 = arith.constant 128 : i32
    %35 = arith.muli %arg0, %c128_i32 : i32
    %36 = vector.broadcast %35 : i32 to vector<1x128xi32>
    %37 = arith.addi %36, %34 : vector<1x128xi32>
    %c32_i32 = arith.constant 32 : i32
    %38 = vector.broadcast %c32_i32 : i32 to vector<1x128xi32>
    %39 = arith.cmpi slt, %37, %38 : vector<1x128xi32>
    %40 = arith.subf %32, %0 : vector<64x128xf32>
    %cst_18 = arith.constant 0.000000e+00 : f32
    %41 = vector.shape_cast %39 : vector<1x128xi1> to vector<1x128xi1>
    %42 = vector.broadcast %41 : vector<1x128xi1> to vector<64x128xi1>
    %43 = vector.broadcast %cst_18 : f32 to vector<64x128xf32>
    %44 = arith.select %42, %40, %43 : vector<64x128xi1>, vector<64x128xf32>
    %45 = arith.mulf %44, %44 : vector<64x128xf32>
    %46 = vector.shape_cast %45 : vector<64x128xf32> to vector<1x64x128xf32>
    %cst_19 = arith.constant dense<0.000000e+00> : vector<1xf32>
    %47 = vector.multi_reduction <add>, %46, %cst_19 [1, 2] : vector<1x64x128xf32> to vector<1xf32>
    %48 = vector.shape_cast %47 : vector<1xf32> to vector<1x1x1xf32>
    %49 = vector.extract %48[0, 0, 0] : f32 from vector<1x1x1xf32>
    %50 = vector.shape_cast %0 : vector<64x128xf32> to vector<1x64x128xf32>
    %cst_20 = arith.constant dense<0.000000e+00> : vector<1xf32>
    %51 = vector.multi_reduction <add>, %50, %cst_20 [1, 2] : vector<1x64x128xf32> to vector<1xf32>
    %52 = vector.shape_cast %51 : vector<1xf32> to vector<1x1x1xf32>
    %53 = vector.extract %52[0, 0, 0] : f32 from vector<1x1x1xf32>
    %54 = arith.mulf %0, %0 : vector<64x128xf32>
    %55 = vector.shape_cast %54 : vector<64x128xf32> to vector<1x64x128xf32>
    %cst_21 = arith.constant dense<0.000000e+00> : vector<1xf32>
    %56 = vector.multi_reduction <add>, %55, %cst_21 [1, 2] : vector<1x64x128xf32> to vector<1xf32>
    %57 = vector.shape_cast %56 : vector<1xf32> to vector<1x1x1xf32>
    %58 = vector.extract %57[0, 0, 0] : f32 from vector<1x1x1xf32>
    %59 = tpu.iota {dimensions = array<i32: 1>} : vector<1x128xi32>
    %c0_i32_22 = arith.constant 0 : i32
    %60 = vector.broadcast %c0_i32_22 : i32 to vector<1x128xi32>
    %61 = arith.cmpi eq, %59, %60 : vector<1x128xi32>
    %cst_23 = arith.constant 0.000000e+00 : f32
    %62 = vector.broadcast %49 : f32 to vector<1x128xf32>
    %63 = vector.broadcast %cst_23 : f32 to vector<1x128xf32>
    %64 = arith.select %61, %62, %63 : vector<1x128xi1>, vector<1x128xf32>
    %c1_i32 = arith.constant 1 : i32
    %65 = vector.broadcast %c1_i32 : i32 to vector<1x128xi32>
    %66 = arith.cmpi eq, %59, %65 : vector<1x128xi32>
    %cst_24 = arith.constant 0.000000e+00 : f32
    %67 = vector.broadcast %53 : f32 to vector<1x128xf32>
    %68 = vector.broadcast %cst_24 : f32 to vector<1x128xf32>
    %69 = arith.select %66, %67, %68 : vector<1x128xi1>, vector<1x128xf32>
    %70 = arith.addf %64, %69 : vector<1x128xf32>
    %c2_i32 = arith.constant 2 : i32
    %71 = vector.broadcast %c2_i32 : i32 to vector<1x128xi32>
    %72 = arith.cmpi eq, %59, %71 : vector<1x128xi32>
    %cst_25 = arith.constant 0.000000e+00 : f32
    %73 = vector.broadcast %58 : f32 to vector<1x128xf32>
    %74 = vector.broadcast %cst_25 : f32 to vector<1x128xf32>
    %75 = arith.select %72, %73, %74 : vector<1x128xi1>, vector<1x128xf32>
    %76 = arith.addf %70, %75 : vector<1x128xf32>
    %77 = vector.shape_cast %76 : vector<1x128xf32> to vector<1x1x128xf32>
    %c0_26 = arith.constant 0 : index
    %c0_27 = arith.constant 0 : index
    %c0_28 = arith.constant 0 : index
    %78 = vector.load %arg8[%c0_26, %c0_27, %c0_28] : memref<1x1x128xf32, #tpu.memory_space<vmem>>, vector<1x1x128xf32>
    tpu.vector_store %arg8[%c0_26, %c0_27, %c0_28], %77 {strides = array<i32>} : memref<1x1x128xf32, #tpu.memory_space<vmem>>, vector<1x1x128xf32>,
    return
  }
  func.func @transform_0(%arg0: i32) -> (i32, i32) {
    %c0_i32 = arith.constant 0 : i32
    %c0_i32_0 = arith.constant 0 : i32
    return %c0_i32, %arg0 : i32, i32
  }
  func.func @transform_1(%arg0: i32) -> (i32, i32) {
    %c0_i32 = arith.constant 0 : i32
    %c0_i32_0 = arith.constant 0 : i32
    %c0_i32_1 = arith.constant 0 : i32
    return %c0_i32, %c0_i32_0 : i32, i32
  }
  func.func @transform_2(%arg0: i32) -> (i32, i32) {
    %c0_i32 = arith.constant 0 : i32
    %c0_i32_0 = arith.constant 0 : i32
    %c0_i32_1 = arith.constant 0 : i32
    return %c0_i32, %c0_i32_0 : i32, i32
  }
  func.func @transform_3(%arg0: i32) -> (i32, i32) {
    %c0_i32 = arith.constant 0 : i32
    %c0_i32_0 = arith.constant 0 : i32
    %c0_i32_1 = arith.constant 0 : i32
    return %c0_i32, %c0_i32_0 : i32, i32
  }
  func.func @transform_4(%arg0: i32) -> (i32, i32) {
    %c0_i32 = arith.constant 0 : i32
    %c0_i32_0 = arith.constant 0 : i32
    %c0_i32_1 = arith.constant 0 : i32
    return %c0_i32, %c0_i32_0 : i32, i32
  }
  func.func @transform_5(%arg0: i32) -> (i32, i32) {
    %c0_i32 = arith.constant 0 : i32
    %c0_i32_0 = arith.constant 0 : i32
    return %c0_i32, %arg0 : i32, i32
  }
  func.func @transform_6(%arg0: i32) -> (i32, i32) {
    %c0_i32 = arith.constant 0 : i32
    %c0_i32_0 = arith.constant 0 : i32
    return %c0_i32, %arg0 : i32, i32
  }
  func.func @transform_7(%arg0: i32) -> (i32, i32, i32) {
    %c0_i32 = arith.constant 0 : i32
    %c0_i32_0 = arith.constant 0 : i32
    %c0_i32_1 = arith.constant 0 : i32
    return %arg0, %c0_i32, %c0_i32_0 : i32, i32, i32
  }
}

</mosaic_0001>

<bundles_post_ra>
// kernel: tpu_custom_call.1
= control target key start
LH: loop header
LB: loop body
LE: loop exit
PB: predicated region body
PF: predicated region fallthrough
CT: control target
= control target key end

     0   :  { %13 = vsyncpa [#allocation3], 0  ;;  %v1110_v5 = vmov 0   ;;  %vm190_vm0 = vcmask 523264   ;;  %s1462_s0 = inlined_call_operand.vmem [shape: f32[64,128], index: 0, kind: input, shape index: {}]   ;;  %s1463_s1 = inlined_call_operand.vmem [shape: bf16[128,64], index: 1, kind: input, shape index: {}]   ;;  %s1464_s2 = inlined_call_operand.vmem [shape: bf16[64,128], index: 2, kind: input, shape index: {}]   ;;  %s1465_s3 = inlined_call_operand.vmem [shape: bf16[64,128], index: 3, kind: input, shape index: {}]   ;;  %s1466_s4 = inlined_call_operand.vmem [shape: f32[128,1], index: 4, kind: input, shape index: {}]   ;;  %s1467_s5 = inlined_call_operand.hbm [shape: s32[1,128], index: 5, kind: output, shape index: {0}]   ;;  %s1468_s6 = inlined_call_operand.hbm [shape: f32[64,128], index: 6, kind: output, shape index: {1}]   ;;  %s1469_s7 = inlined_call_operand.hbm [shape: f32[1,1,128], index: 7, kind: output, shape index: {2}]  }
   0x1   :  { %v1160_v0 = vld [vmem:[%s1462_s0 + $0x30] sm:$0xff]  ;;  %v1165_v1 = vld [vmem:[%s1462_s0 + $0x38] sm:$0xff]  ;;  %v1170_v2 = vld [vmem:[%s1462_s0 + $0x20] sm:$0xff]  ;;  %1029 = vset.pattern.permute.xlu1 %v1110_v5  ;;  %1028 = vset.pattern.permute.xlu0 %v1110_v5 }
   0x2   :  { %v53_v3 = vpack.c.bf16 %v1165_v1, %v1160_v0  ;;  %v1177_v4 = vld [vmem:[%s1462_s0 + $0x28] sm:$0xff]  ;;  %v1184_v7 = vld [vmem:[%s1462_s0 + $0x10] sm:$0xff]  ;;  %v1189_v8 = vld [vmem:[%s1462_s0 + $0x18] sm:$0xff] }
   0x3   :  { %v52_v6 = vpack.c.bf16 %v1177_v4, %v1170_v2  ;;  %v1030_v9 = vld [vmem:[%s1463_s1] sm:$0xff]   ;;  %v51_v10 = vpack.c.bf16 %v1189_v8, %v1184_v7  ;;  %v1205_v12 = vld [vmem:[%s1462_s0 + $0x8] sm:$0xff]  ;;  %v56_v14 = vld [vmem:[%s1466_s4 + $0x10] sm:$0xff] }
   0x4   :  { %943 = vmatprep.subr.bf16.mxu0 %v53_v3  ;;  %v1199_v11 = vld [vmem:[%s1462_s0] sm:$0xff]  ;;  %951 = vmatprep.mubr.msk.bf16.mxu0 %vm190_vm0, %v1030_v9  ;;  %v57_v16 = vld [vmem:[%s1466_s4 + $0x18] sm:$0xff]  ;;  %v55_v17 = vld [vmem:[%s1466_s4 + $0x8] sm:$0xff] }
   0x5   :  { %944 = vmatpush3.bf16.msra.mxu0 %v53_v3  ;;  %v50_v13 = vpack.c.bf16 %v1205_v12, %v1199_v11  ;;  %82 = vperm.xlu1 %1029, %v56_v14   ;;  %v54_v15 = vld [vmem:[%s1466_s4] sm:$0xff]  ;;  %v1031_v18 = vld [vmem:[%s1463_s1 + $0x8] sm:$0xff]   ;;  %v1032_v19 = vld [vmem:[%s1463_s1 + $0x10] sm:$0xff]  }
   0x6   :  { %945 = vmatprep.subr.bf16.mxu0 %v52_v6  ;;  %72 = vperm.xlu0 %1028, %v54_v15   ;;  %v59_v20 = vld [vmem:[%s1466_s4 + $0x28] sm:$0xff]  ;;  %v58_v21 = vld [vmem:[%s1466_s4 + $0x20] sm:$0xff]  ;;  %v61_v22 = vld [vmem:[%s1466_s4 + $0x38] sm:$0xff] }
   0x7   :  { %v60_v23 = vld [vmem:[%s1466_s4 + $0x30] sm:$0xff] }
   0x9   :  { %946 = vmatpush3.bf16.msra.mxu0 %v52_v6  ;;  %87 = vperm.xlu1 %1029, %v57_v16  }
   0xa   :  { %947 = vmatprep.subr.bf16.mxu0 %v51_v10  ;;  %77 = vperm.xlu0 %1028, %v55_v17  }
   0xd   :  { %948 = vmatpush3.bf16.msra.mxu0 %v51_v10  ;;  %97 = vperm.xlu1 %1029, %v59_v20  }
   0xe   :  { %949 = vmatprep.subr.bf16.mxu0 %v50_v13  ;;  %92 = vperm.xlu0 %1028, %v58_v21  }
  0x11   :  { %950 = vmatpush3.bf16.msra.mxu0 %v50_v13 }
  0x14   :  { %952 = vmatmul.mubr.msk.bf16.vlgmr.msra.gmra.mxu0 %vm190_vm0, %v1031_v18 }
  0x15   :  { %955 = vmatprep.mubr.msk.bf16.mxu0 %vm190_vm0, %v1032_v19 }
  0x16   :  { %14 = vsyncpa [#allocation5], 0  ;;  %v1033_v24 = vld [vmem:[%s1463_s1 + $0x18] sm:$0xff]   ;;  %107 = vperm.xlu1 %1029, %v61_v22   ;;  %v1034_v25 = vld [vmem:[%s1463_s1 + $0x20] sm:$0xff]   ;;  %102 = vperm.xlu0 %1028, %v60_v23   ;;  %v376_v45 = vlaneseq }
  0x17   :  { %v63_v26 = vld [vmem:[%s1466_s4 + $0x48] sm:$0xff]  ;;  %v62_v27 = vld [vmem:[%s1466_s4 + $0x40] sm:$0xff]  ;;  %v65_v28 = vld [vmem:[%s1466_s4 + $0x58] sm:$0xff] }
  0x18   :  { %v64_v29 = vld [vmem:[%s1466_s4 + $0x50] sm:$0xff]  ;;  %v1035_v30 = vld [vmem:[%s1463_s1 + $0x28] sm:$0xff]   ;;  %v66_v33 = vld [vmem:[%s1466_s4 + $0x60] sm:$0xff]  ;;  %v1292_v49 = vshrl.u32 %v376_v45, 7 }
  0x19   :  { %v1036_v31 = vld [vmem:[%s1463_s1 + $0x30] sm:$0xff]   ;;  %v67_v32 = vld [vmem:[%s1466_s4 + $0x68] sm:$0xff]  ;;  %v69_v34 = vld [vmem:[%s1466_s4 + $0x78] sm:$0xff] }
  0x1a   :  { %117 = vperm.xlu1 %1029, %v63_v26   ;;  %112 = vperm.xlu0 %1028, %v62_v27   ;;  %v68_v35 = vld [vmem:[%s1466_s4 + $0x70] sm:$0xff]  ;;  %v1037_v36 = vld [vmem:[%s1463_s1 + $0x38] sm:$0xff]   ;;  %v1038_v37 = vld [vmem:[%s1465_s3] sm:$0xff]   ;;  %v1297_v56 = vadd.s32 16, %v1292_v49  ;;  %v1300_v58 = vadd.s32 24, %v1292_v49  ;;  %v1303_v61 = vadd.s32 8, %v1292_v49 }
  0x1b   :  { %v1039_v38 = vld [vmem:[%s1464_s2] sm:$0xff]   ;;  %983 = vmatprep.mubr.bf16.mxu1 %v1038_v37  ;;  %v1306_v63 = vadd.s32 48, %v1292_v49  ;;  %v1309_v5 = vadd.s32 32, %v1292_v49  ;;  %v1312_v6 = vadd.s32 56, %v1292_v49  ;;  %v1315_v13 = vadd.s32 40, %v1292_v49 }
  0x1c   :  { %956 = vmatmul.mubr.msk.bf16.gmra.mxu0 %vm190_vm0, %v1033_v24  ;;  %v1318_v14 = vadd.s32 80, %v1292_v49  ;;  %v1323_v23 = vadd.s32 64, %v1292_v49 }
  0x1d   :  { %959 = vmatprep.mubr.msk.bf16.mxu0 %vm190_vm0, %v1034_v25 }
  0x1e   :  { %127 = vperm.xlu1 %1029, %v65_v28   ;;  %122 = vperm.xlu0 %1028, %v64_v29   ;;  %v1327_v29 = vadd.s32 88, %v1292_v49 }
  0x22   :  { %137 = vperm.xlu1 %1029, %v67_v32   ;;  %132 = vperm.xlu0 %1028, %v66_v33  }
  0x24   :  { %960 = vmatmul.mubr.msk.bf16.gmra.mxu0 %vm190_vm0, %v1035_v30  ;;  %v1330_v30 = vadd.s32 72, %v1292_v49 }
  0x25   :  { %963 = vmatprep.mubr.msk.bf16.mxu0 %vm190_vm0, %v1036_v31 }
  0x26   :  { %147 = vperm.xlu1 %1029, %v69_v34   ;;  %142 = vperm.xlu0 %1028, %v68_v35  }
  0x2c   :  { %964 = vmatmul.mubr.msk.bf16.gmra.mxu0 %vm190_vm0, %v1037_v36 }
  0x2d   :  { %1007 = vmatprep.mubr.bf16.mxu0 %v1039_v38  ;;  %v1333_v38 = vadd.s32 112, %v1292_v49 }
  0x80   :  { %v83_v40 = vpop.permute.xlu1 %82 }
  0x81   :  { %v73_v39 = vpop.permute.xlu0 %72 }
  0x84   :  { %v88_v42 = vpop.permute.xlu1 %87 }
  0x85   :  { %v78_v41 = vpop.permute.xlu0 %77 }
  0x88   :  { %v98_v44 = vpop.permute.xlu1 %97 }
  0x89   :  { %v93_v43 = vpop.permute.xlu0 %92 }
  0x91   :  { %v103_v46 = vpop.permute.xlu0 %102  ;;  %v108_v52 = vpop.permute.xlu1 %107 }
  0x95   :  { %v1294_v53 = vpop.permute.xlu0 %112  ;;  %v1320_v15 = vpop.permute.xlu1 %117 }
  0x99   :  { %v123_v19 = vpop.permute.xlu0 %122 }
  0xd4   :  { %v953_v47 = vpop.f32.mrf.mxu0 }
  0xd5   :  { %v258_v50 = vadd.f32 %v953_v47, %v83_v40 }
  0xd6   :  { %v249_v48 = vpop.f32.mrf.mxu0 }
  0xd7   :  { %v250_v54 = vadd.f32 %v249_v48, %v73_v39  ;;  %v346_v59 = vxor.u32 2147483647, %v258_v50  ;;  %vm330_vm1 = vcmp.ge.s32.totalorder %v258_v50, 0  ;;  %v128_v39 = vpop.permute.xlu1 %127 }
  0xd8   :  { %v954_v51 = vpop.f32.mrf.mxu0 }
  0xd9   :  { %v261_v57 = vadd.f32 %v954_v51, %v88_v42  ;;  %vm328_vm2 = vcmp.ge.s32.totalorder %v250_v54, 0  ;;  %v344_v9 = vxor.u32 2147483647, %v250_v54  ;;  %v362_v20 = vsel %vm330_vm1, %v258_v50, %v346_v59 }
  0xda   :  { %v252_v55 = vpop.f32.mrf.mxu0  ;;  %v395_v35 = vand.u32 4294967168, %v362_v20  ;;  %v1336_v51 = vadd.s32 96, %v1292_v49 }
  0xdb   :  { %v253_v60 = vadd.f32 %v252_v55, %v78_v41  ;;  %v347_v16 = vxor.u32 2147483647, %v261_v57  ;;  %vm331_vm4 = vcmp.ge.s32.totalorder %v261_v57, 0  ;;  %v360_v27 = vsel %vm328_vm2, %v250_v54, %v344_v9 }
  0xdc   :  { %v957_v62 = vpop.f32.mrf.mxu0  ;;  %v393_v47 = vand.u32 4294967168, %v360_v27  ;;  %v1339_v54 = vadd.s32 104, %v1292_v49  ;;  %v1342_v55 = vadd.s32 120, %v1292_v49 }
  0xdd   :  { %v274_v3 = vadd.f32 %v957_v62, %v103_v46  ;;  %v345_v21 = vxor.u32 2147483647, %v253_v60  ;;  %vm329_vm6 = vcmp.ge.s32.totalorder %v253_v60, 0  ;;  %v363_v31 = vsel %vm331_vm4, %v261_v57, %v347_v16  ;;  %v133_v46 = vpop.permute.xlu0 %132 }
  0xde   :  { %v265_v10 = vpop.f32.mrf.mxu0  ;;  %v396_v48 = vand.u32 4294967168, %v363_v31 }
  0xdf   :  { %vm334_vm3 = vcmp.ge.s32.totalorder %v274_v3, 0  ;;  %v350_v17 = vxor.u32 2147483647, %v274_v3  ;;  %v266_v18 = vadd.f32 %v265_v10, %v93_v43  ;;  %v361_v40 = vsel %vm329_vm6, %v253_v60, %v345_v21  ;;  %v138_v21 = vpop.permute.xlu1 %137 }
  0xe0   :  { %v958_v22 = vpop.f32.mrf.mxu0  ;;  %v394_v57 = vand.u32 4294967168, %v361_v40 }
  0xe1   :  { %v366_v24 = vsel %vm334_vm3, %v274_v3, %v350_v17  ;;  %vm332_vm5 = vcmp.ge.s32.totalorder %v266_v18, 0  ;;  %v348_v25 = vxor.u32 2147483647, %v266_v18  ;;  %v277_v26 = vadd.f32 %v958_v22, %v108_v52 }
  0xe2   :  { %v268_v28 = vpop.f32.mrf.mxu0  ;;  %v399_v36 = vand.u32 4294967168, %v366_v24  ;;  %v411_v3 = vor.u32 %v395_v35, %v1297_v56  ;;  %v409_v17 = vor.u32 %v393_v47, %v1292_v49 }
  0xe3   :  { %v364_v32 = vsel %vm332_vm5, %v266_v18, %v348_v25  ;;  %v351_v33 = vxor.u32 2147483647, %v277_v26  ;;  %v269_v34 = vadd.f32 %v268_v28, %v98_v44  ;;  %vm335_vm7 = vcmp.ge.s32.totalorder %v277_v26, 0 }
  0xe4   :  { %v961_v37 = vpop.f32.mrf.mxu0  ;;  %v397_v41 = vand.u32 4294967168, %v364_v32  ;;  %v415_v59 = vor.u32 %v399_v36, %v1306_v63  ;;  %v412_v18 = vor.u32 %v396_v48, %v1300_v58 }
  0xe5   :  { %v349_v42 = vxor.u32 2147483647, %v269_v34  ;;  %v290_v43 = vadd.f32 %v961_v37, %v123_v19  ;;  %vm333_vm8 = vcmp.ge.s32.totalorder %v269_v34, 0  ;;  %v367_v44 = vsel %vm335_vm7, %v277_v26, %v351_v33 }
  0xe6   :  { %v281_v50 = vpop.f32.mrf.mxu0  ;;  %v413_v9 = vor.u32 %v397_v41, %v1309_v5  ;;  %v400_v19 = vand.u32 4294967168, %v367_v44  ;;  %v410_v26 = vor.u32 %v394_v57, %v1303_v61  ;;  %vm429_vm12 = vcmp.lt.s32.totalorder %v411_v3, %v415_v59 }
  0xe7   :  { %v354_v52 = vxor.u32 2147483647, %v290_v43  ;;  %vm338_vm9 = vcmp.ge.s32.totalorder %v290_v43, 0  ;;  %v282_v60 = vadd.f32 %v281_v50, %v1294_v53  ;;  %v365_v10 = vsel %vm333_vm8, %v269_v34, %v349_v42  ;;  %v143_v53 = vpop.permute.xlu0 %142 }
  0xe8   :  { %v962_v62 = vpop.f32.mrf.mxu0  ;;  %v398_v27 = vand.u32 4294967168, %v365_v10  ;;  %vm425_vm13 = vcmp.lt.s32.totalorder %v409_v17, %v413_v9  ;;  %v416_v35 = vor.u32 %v400_v19, %v1312_v6  ;;  %v430_v47 = vsel %vm429_vm12, %v411_v3, %v415_v59 }
  0xe9   :  { %v293_v16 = vadd.f32 %v962_v62, %v128_v39  ;;  %vm336_vm10 = vcmp.ge.s32.totalorder %v282_v60, 0  ;;  %v370_v22 = vsel %vm338_vm9, %v290_v43, %v354_v52  ;;  %v352_v24 = vxor.u32 2147483647, %v282_v60 }
  0xea   :  { %v284_v20 = vpop.f32.mrf.mxu0  ;;  %v403_v36 = vand.u32 4294967168, %v370_v22  ;;  %v414_v43 = vor.u32 %v398_v27, %v1315_v13  ;;  %vm431_vm1 = vcmp.lt.s32.totalorder %v412_v18, %v416_v35 }
  0xeb   :  { %vm339_vm11 = vcmp.ge.s32.totalorder %v293_v16, 0  ;;  %v355_v25 = vxor.u32 2147483647, %v293_v16  ;;  %v285_v28 = vadd.f32 %v284_v20, %v1320_v15  ;;  %v368_v32 = vsel %vm336_vm10, %v282_v60, %v352_v24  ;;  %v148_v60 = vpop.permute.xlu1 %147 }
  0xec   :  { %v965_v31 = vpop.f32.mrf.mxu0  ;;  %v401_v37 = vand.u32 4294967168, %v368_v32  ;;  %v426_v15 = vsel %vm425_vm13, %v409_v17, %v413_v9  ;;  %v419_v62 = vor.u32 %v403_v36, %v1318_v14  ;;  %vm427_vm2 = vcmp.lt.s32.totalorder %v410_v26, %v414_v43 }
  0xed   :  { %v371_v33 = vsel %vm339_vm11, %v293_v16, %v355_v25  ;;  %v306_v34 = vadd.f32 %v965_v31, %v143_v53  ;;  %vm337_vm14 = vcmp.ge.s32.totalorder %v285_v28, 0  ;;  %v353_v40 = vxor.u32 2147483647, %v285_v28 }
  0xee   :  { %v297_v39 = vpop.f32.mrf.mxu0  ;;  %v404_v48 = vand.u32 4294967168, %v371_v33  ;;  %v417_v10 = vor.u32 %v401_v37, %v1323_v23  ;;  %vm437_vm5 = vcmp.lt.s32.totalorder %v430_v47, %v419_v62  ;;  %v428_v31 = vsel %vm427_vm2, %v410_v26, %v414_v43 }
  0xef   :  { %vm342_vm15 = vcmp.ge.s32.totalorder %v306_v34, 0  ;;  %v358_v41 = vxor.u32 2147483647, %v306_v34  ;;  %v298_v42 = vadd.f32 %v297_v39, %v133_v46  ;;  %v369_v44 = vsel %vm337_vm14, %v285_v28, %v353_v40 }
  0xf0   :  { %v966_v50 = vpop.f32.mrf.mxu0  ;;  %v402_v16 = vand.u32 4294967168, %v369_v44  ;;  %v420_v59 = vor.u32 %v404_v48, %v1327_v29  ;;  %vm433_vm6 = vcmp.lt.s32.totalorder %v426_v15, %v417_v10  ;;  %v432_v28 = vsel %vm431_vm1, %v412_v18, %v416_v35 }
  0xf1   :  { %v374_v52 = vsel %vm342_vm15, %v306_v34, %v358_v41  ;;  %vm340_vm0 = vcmp.ge.s32.totalorder %v298_v42, 0  ;;  %v356_v57 = vxor.u32 2147483647, %v298_v42  ;;  %v309_v22 = vadd.f32 %v966_v50, %v148_v60 }
  0xf2   :  { %v407_v19 = vand.u32 4294967168, %v374_v52  ;;  %v300_v20 = vpop.f32.mrf.mxu0  ;;  %v418_v3 = vor.u32 %v402_v16, %v1330_v30  ;;  %vm439_vm7 = vcmp.lt.s32.totalorder %v432_v28, %v420_v59  ;;  %v434_v36 = vsel %vm433_vm6, %v426_v15, %v417_v10 }
  0xf3   :  { %v372_v46 = vsel %vm340_vm0, %v298_v42, %v356_v57  ;;  %v301_v24 = vadd.f32 %v300_v20, %v138_v21  ;;  %vm343_vm3 = vcmp.ge.s32.totalorder %v309_v22, 0  ;;  %v359_v17 = vxor.u32 2147483647, %v309_v22 }
  0xf4   :  { %v405_v9 = vand.u32 4294967168, %v372_v46  ;;  %v423_v27 = vor.u32 %v407_v19, %v1333_v38  ;;  %vm435_vm8 = vcmp.lt.s32.totalorder %v428_v31, %v418_v3  ;;  %v438_v37 = vsel %vm437_vm5, %v430_v47, %v419_v62 }
  0xf5   :  { %vm341_vm4 = vcmp.ge.s32.totalorder %v301_v24, 0  ;;  %v357_v25 = vxor.u32 2147483647, %v301_v24  ;;  %v375_v21 = vsel %vm343_vm3, %v309_v22, %v359_v17  ;;  %v436_v41 = vsel %vm435_vm8, %v428_v31, %v418_v3 }
  0xf6   :  { %v421_v53 = vor.u32 %v405_v9, %v1336_v51  ;;  %v408_v33 = vand.u32 4294967168, %v375_v21  ;;  %vm445_vm10 = vcmp.lt.s32.totalorder %v438_v37, %v423_v27  ;;  %v440_v42 = vsel %vm439_vm7, %v432_v28, %v420_v59 }
  0xf7   :  { %v373_v32 = vsel %vm341_vm4, %v301_v24, %v357_v25  ;;  %v446_v35 = vsel %vm445_vm10, %v438_v37, %v423_v27  ;;  %v1111_v16 = vmov 1.0|1.0   ;;  %v774_v59 = vmul.f32 %v1184_v7, %v1184_v7 }
  0xf8   :  { %v406_v34 = vand.u32 4294967168, %v373_v32  ;;  %vm441_vm9 = vcmp.lt.s32.totalorder %v434_v36, %v421_v53  ;;  %v424_v40 = vor.u32 %v408_v33, %v1342_v55  ;;  %v1413_v3 = vand.u32 127, %v376_v45 }
  0xf9   :  { %v442_v18 = vsel %vm441_vm9, %v434_v36, %v421_v53  ;;  %v775_v45 = vmul.f32 %v1189_v8, %v1189_v8 }
  0xfa   :  { %v422_v39 = vor.u32 %v406_v34, %v1339_v54  ;;  %vm447_vm12 = vcmp.lt.s32.totalorder %v440_v42, %v424_v40 }
  0xfb   :  { %v448_v43 = vsel %vm447_vm12, %v440_v42, %v424_v40 }
  0xfc   :  { %vm443_vm11 = vcmp.lt.s32.totalorder %v436_v41, %v422_v39  ;;  %vm451_vm14 = vcmp.lt.s32.totalorder %v446_v35, %v448_v43 }
  0xfd   :  { %v444_v26 = vsel %vm443_vm11, %v436_v41, %v422_v39  ;;  %v452_v50 = vsel %vm451_vm14, %v446_v35, %v448_v43 }
  0xfe   :  { %vm449_vm13 = vcmp.lt.s32.totalorder %v442_v18, %v444_v26 }
  0xff   :  { %v450_v48 = vsel %vm449_vm13, %v442_v18, %v444_v26 }
 0x100   :  { %vm453_vm15 = vcmp.lt.s32.totalorder %v450_v48, %v452_v50 }
 0x101   :  { %v454_v47 = vsel %vm453_vm15, %v450_v48, %v452_v50 }
 0x102   :  { %v455_v15 = vrot.slane %v454_v47, 4 }
 0x104   :  { %vm456_vm0 = vcmp.lt.s32.totalorder %v454_v47, %v455_v15 }
 0x105   :  { %v457_v44 = vsel %vm456_vm0, %v454_v47, %v455_v15 }
 0x106   :  { %v458_v52 = vrot.slane %v457_v44, 2 }
 0x108   :  { %vm459_vm1 = vcmp.lt.s32.totalorder %v457_v44, %v458_v52 }
 0x109   :  { %v460_v57 = vsel %vm459_vm1, %v457_v44, %v458_v52 }
 0x10a   :  { %v461_v60 = vrot.slane %v460_v57, 1 }
 0x10c   :  { %vm462_vm2 = vcmp.lt.s32.totalorder %v460_v57, %v461_v60 }
 0x10d   :  { %v463_v62 = vsel %vm462_vm2, %v460_v57, %v461_v60 }
 0x10e   :  { %v464_v10 = vand.u32 127, %v463_v62 }
 0x110   :  { %vm480_vm3 = vcmp.eq.s32.totalorder %v1333_v38, %v464_v10  ;;  %vm481_vm4 = vcmp.eq.s32.totalorder %v1342_v55, %v464_v10  ;;  %465 = vst [vmem:[#allocation2] sm:$0x1] %v464_v10  ;;  %vm478_vm5 = vcmp.eq.s32.totalorder %v1336_v51, %v464_v10  ;;  %vm479_vm6 = vcmp.eq.s32.totalorder %v1339_v54, %v464_v10 }
 0x111   :  { %vm871_vm7 = vmpackc.low %vm481_vm4, %vm480_vm3  ;;  %vm476_vm9 = vcmp.eq.s32.totalorder %v1318_v14, %v464_v10  ;;  %vm477_vm10 = vcmp.eq.s32.totalorder %v1327_v29, %v464_v10  ;;  %vm474_vm12 = vcmp.eq.s32.totalorder %v1323_v23, %v464_v10  ;;  %vm475_vm13 = vcmp.eq.s32.totalorder %v1330_v30, %v464_v10 }
 0x112   :  { %967 = vmatprep.subr.msk.bf16.mxu1 %vm871_vm7, %v1111_v16  ;;  %991 = vmatprep.subr.msk.bf16.mxu0 %vm871_vm7, %v1111_v16  ;;  %vm873_vm8 = vmpackc.low %vm479_vm6, %vm478_vm5  ;;  %vm472_vm15 = vcmp.eq.s32.totalorder %v1306_v63, %v464_v10  ;;  %vm473_vm0 = vcmp.eq.s32.totalorder %v1312_v6, %v464_v10  ;;  %vm470_vm2 = vcmp.eq.s32.totalorder %v1309_v5, %v464_v10  ;;  %v1044_v63 = vld [vmem:[%s1465_s3 + $0x18] sm:$0xff]  }
 0x113   :  { %968 = vmatpush3.bf16.msk.msra.mxu1 %vm871_vm7, %v1111_v16  ;;  %992 = vmatpush3.bf16.msk.msra.mxu0 %vm871_vm7, %v1111_v16  ;;  %vm875_vm11 = vmpackc.low %vm477_vm10, %vm476_vm9  ;;  %vm471_vm3 = vcmp.eq.s32.totalorder %v1315_v13, %v464_v10  ;;  %vm468_vm5 = vcmp.eq.s32.totalorder %v1297_v56, %v464_v10  ;;  %vm469_vm6 = vcmp.eq.s32.totalorder %v1300_v58, %v464_v10  ;;  %v1040_v56 = vld [vmem:[%s1465_s3 + $0x8] sm:$0xff]   ;;  %v1045_v5 = vld [vmem:[%s1464_s2 + $0x18] sm:$0xff]  }
 0x114   :  { %969 = vmatprep.subr.msk.bf16.mxu1 %vm873_vm8, %v1111_v16  ;;  %993 = vmatprep.subr.msk.bf16.mxu0 %vm873_vm8, %v1111_v16  ;;  %vm877_vm14 = vmpackc.low %vm475_vm13, %vm474_vm12  ;;  %vm467_vm9 = vcmp.eq.s32.totalorder %v1303_v61, %v464_v10  ;;  %v1041_v58 = vld [vmem:[%s1464_s2 + $0x8] sm:$0xff]   ;;  %v1043_v61 = vld [vmem:[%s1464_s2 + $0x10] sm:$0xff]   ;;  %v756_v6 = vadd.f32 %v1205_v12, %v1199_v11  ;;  %v772_v51 = vmul.f32 %v1199_v11, %v1199_v11  ;;  %s1112_s2 = smov [#allocation4]  }
 0x115   :  { %vm879_vm1 = vmpackc.low %vm473_vm0, %vm472_vm15  ;;  %v773_v54 = vmul.f32 %v1205_v12, %v1205_v12 }
 0x116   :  { %vm881_vm4 = vmpackc.low %vm471_vm3, %vm470_vm2  ;;  %v757_v13 = vadd.f32 %v756_v6, %v1184_v7 }
 0x117   :  { %970 = vmatpush3.bf16.msk.msra.mxu1 %vm873_vm8, %v1111_v16  ;;  %994 = vmatpush3.bf16.msk.msra.mxu0 %vm873_vm8, %v1111_v16  ;;  %vm883_vm7 = vmpackc.low %vm469_vm6, %vm468_vm5  ;;  %vm466_vm8 = vcmp.eq.s32.totalorder %v1292_v49, %v464_v10  ;;  %v1042_v49 = vld [vmem:[%s1465_s3 + $0x10] sm:$0xff]   ;;  %v780_v25 = vadd.f32 %v773_v54, %v772_v51  ;;  %s823_s3 = sshll.u32 %s1112_s2, 4  ;;  %s824_s3 = int_to_ptr.vmem [resolvable:$true] %s823_s3 }
 0x118   :  { %971 = vmatprep.subr.msk.bf16.mxu1 %vm875_vm11, %v1111_v16  ;;  %995 = vmatprep.subr.msk.bf16.mxu0 %vm875_vm11, %v1111_v16  ;;  %vm885_vm10 = vmpackc.low %vm467_vm9, %vm466_vm8  ;;  %v758_v14 = vadd.f32 %v757_v13, %v1189_v8  ;;  %s1046_s30 = scalar_lea.vmem %s824_s3, 1024  ;;  %p1051_p1 = scmp.lt.s32.totalorder %s824_s3, %s824_s3 }
 0x119   :  { %v781_v36 = vadd.f32 %v780_v25, %v774_v59  ;;  %p1047_p0 = scmp.ne.s32.totalorder %s824_s3, %s1046_s30  ;;  %p1052_p2 = scmp.lt.s32.totalorder %s1046_s30, %s1046_s30 }
 0x11a   :  { %v759_v23 = vadd.f32 %v758_v14, %v1170_v2 }
 0x11b   :  { %972 = vmatpush3.bf16.msk.msra.mxu1 %vm875_vm11, %v1111_v16  ;;  %996 = vmatpush3.bf16.msk.msra.mxu0 %vm875_vm11, %v1111_v16  ;;  %vm713_vm11 = vcmp.lt.s32.totalorder %v1413_v3, 32  ;;  %v782_v47 = vadd.f32 %v781_v36, %v775_v45  ;;  %p1053_p3 = por %p1052_p2, %p1051_p1 }
 0x11c   :  { %973 = vmatprep.subr.msk.bf16.mxu1 %vm877_vm14, %v1111_v16  ;;  %997 = vmatprep.subr.msk.bf16.mxu0 %vm877_vm14, %v1111_v16  ;;  %v760_v29 = vadd.f32 %v759_v23, %v1177_v4 }
 0x11d   :  { %p1054_p4 = pnand %p1053_p3, %p1047_p0 }
 0x11e   :  { %v761_v30 = vadd.f32 %v760_v29, %v1160_v0 }
 0x11f   :  { %974 = vmatpush3.bf16.msk.msra.mxu1 %vm877_vm14, %v1111_v16  ;;  %998 = vmatpush3.bf16.msk.msra.mxu0 %vm877_vm14, %v1111_v16 }
 0x120   :  { %975 = vmatprep.subr.msk.bf16.mxu1 %vm879_vm1, %v1111_v16  ;;  %999 = vmatprep.subr.msk.bf16.mxu0 %vm879_vm1, %v1111_v16  ;;  %v762_v38 = vadd.f32 %v761_v30, %v1165_v1 }
 0x122   :  { %763 = vadd.xlane.f32.xlu1 %v762_v38  ;;  %v778_v38 = vmul.f32 %v1160_v0, %v1160_v0 }
 0x123   :  { %976 = vmatpush3.bf16.msk.msra.mxu1 %vm879_vm1, %v1111_v16  ;;  %1000 = vmatpush3.bf16.msk.msra.mxu0 %vm879_vm1, %v1111_v16 }
 0x124   :  { %977 = vmatprep.subr.msk.bf16.mxu1 %vm881_vm4, %v1111_v16  ;;  %1001 = vmatprep.subr.msk.bf16.mxu0 %vm881_vm4, %v1111_v16 }
 0x127   :  { %978 = vmatpush3.bf16.msk.msra.mxu1 %vm881_vm4, %v1111_v16  ;;  %1002 = vmatpush3.bf16.msk.msra.mxu0 %vm881_vm4, %v1111_v16 }
 0x128   :  { %979 = vmatprep.subr.msk.bf16.mxu1 %vm883_vm7, %v1111_v16  ;;  %1003 = vmatprep.subr.msk.bf16.mxu0 %vm883_vm7, %v1111_v16 }
 0x12b   :  { %980 = vmatpush3.bf16.msk.msra.mxu1 %vm883_vm7, %v1111_v16  ;;  %1004 = vmatpush3.bf16.msk.msra.mxu0 %vm883_vm7, %v1111_v16 }
 0x12c   :  { %981 = vmatprep.subr.msk.bf16.mxu1 %vm885_vm10, %v1111_v16  ;;  %1005 = vmatprep.subr.msk.bf16.mxu0 %vm885_vm10, %v1111_v16 }
 0x12f   :  { %982 = vmatpush3.bf16.msk.msra.mxu1 %vm885_vm10, %v1111_v16  ;;  %1006 = vmatpush3.bf16.msk.msra.mxu0 %vm885_vm10, %v1111_v16 }
 0x132   :  { %984 = vmatmul.mubr.bf16.vlgmr.msra.gmra.mxu1 %v1040_v56  ;;  %1008 = vmatmul.mubr.bf16.vlgmr.msra.gmra.mxu0 %v1041_v58 }
 0x133   :  { %987 = vmatprep.mubr.bf16.mxu1 %v1042_v49  ;;  %1011 = vmatprep.mubr.bf16.mxu0 %v1043_v61  ;;  %v777_v61 = vmul.f32 %v1177_v4, %v1177_v4 }
 0x13a   :  { %988 = vmatmul.mubr.bf16.gmra.mxu1 %v1044_v63  ;;  %1012 = vmatmul.mubr.bf16.gmra.mxu0 %v1045_v5 }
 0x1f2   :  { %v985_v55 = vpop.f32.mrf.mxu1  ;;  %v1009_v19 = vpop.f32.mrf.mxu0 }
 0x1f3   :  { %v678_v20 = vadd.f32 %v1009_v19, %v985_v55 }
 0x1f4   :  { %v580_v46 = vpop.f32.mrf.mxu1  ;;  %v669_v22 = vpop.f32.mrf.mxu0 }
 0x1f5   :  { %702 = vst [vmem:[#allocation4 + $0x10] sm:$0xff] %v678_v20  ;;  %v670_v24 = vadd.f32 %v669_v22, %v580_v46  ;;  %v716_v21 = vsub.f32 %v678_v20, %v1184_v7  ;;  %v779_v46 = vmul.f32 %v1165_v1, %v1165_v1 }
 0x1f6   :  { %v986_v9 = vpop.f32.mrf.mxu1  ;;  %v1010_v17 = vpop.f32.mrf.mxu0 }
 0x1f7   :  { %700 = vst [vmem:[#allocation4] sm:$0xff] %v670_v24  ;;  %v714_v53 = vsub.f32 %v670_v24, %v1199_v11  ;;  %v681_v27 = vadd.f32 %v1010_v17, %v986_v9  ;;  %v726_v42 = vsel %vm713_vm11, %v716_v21, 0.0 }
 0x1f8   :  { %v583_v28 = vpop.f32.mrf.mxu1  ;;  %v672_v31 = vpop.f32.mrf.mxu0  ;;  %v734_v52 = vmul.f32 %v726_v42, %v726_v42 }
 0x1f9   :  { %703 = vst [vmem:[#allocation4 + $0x18] sm:$0xff] %v681_v27  ;;  %v673_v32 = vadd.f32 %v672_v31, %v583_v28  ;;  %v724_v37 = vsel %vm713_vm11, %v714_v53, 0.0  ;;  %v717_v11 = vsub.f32 %v681_v27, %v1189_v8  ;;  %v776_v8 = vmul.f32 %v1170_v2, %v1170_v2 }
 0x1fa   :  { %v989_v33 = vpop.f32.mrf.mxu1  ;;  %v1013_v34 = vpop.f32.mrf.mxu0  ;;  %v732_v35 = vmul.f32 %v724_v37, %v724_v37 }
 0x1fb   :  { %701 = vst [vmem:[#allocation4 + $0x8] sm:$0xff] %v673_v32  ;;  %v715_v39 = vsub.f32 %v673_v32, %v1205_v12  ;;  %v694_v40 = vadd.f32 %v1013_v34, %v989_v33  ;;  %v727_v12 = vsel %vm713_vm11, %v717_v11, 0.0  ;;  %v783_v63 = vadd.f32 %v782_v47, %v776_v8 }
 0x1fc   :  { %v596_v7 = vpop.f32.mrf.mxu1  ;;  %v685_v41 = vpop.f32.mrf.mxu0  ;;  %v735_v58 = vmul.f32 %v727_v12, %v727_v12 }
 0x1fd   :  { %v725_v18 = vsel %vm713_vm11, %v715_v39, 0.0  ;;  %706 = vst [vmem:[#allocation4 + $0x30] sm:$0xff] %v694_v40  ;;  %v686_v26 = vadd.f32 %v685_v41, %v596_v7  ;;  %v720_v10 = vsub.f32 %v694_v40, %v1160_v0  ;;  %v784_v51 = vadd.f32 %v783_v63, %v777_v61 }
 0x1fe   :  { %v733_v43 = vmul.f32 %v725_v18, %v725_v18  ;;  %v990_v48 = vpop.f32.mrf.mxu1  ;;  %v1014_v50 = vpop.f32.mrf.mxu0 }
 0x1ff   :  { %704 = vst [vmem:[#allocation4 + $0x20] sm:$0xff] %v686_v26  ;;  %v718_v15 = vsub.f32 %v686_v26, %v1170_v2  ;;  %v697_v44 = vadd.f32 %v1014_v50, %v990_v48  ;;  %v730_v14 = vsel %vm713_vm11, %v720_v10, 0.0  ;;  %v785_v22 = vadd.f32 %v784_v51, %v778_v38 }
 0x200   :  { %v740_v57 = vadd.f32 %v733_v43, %v732_v35  ;;  %v599_v60 = vpop.f32.mrf.mxu1  ;;  %v688_v62 = vpop.f32.mrf.mxu0  ;;  %v738_v55 = vmul.f32 %v730_v14, %v730_v14 }
 0x201   :  { %v728_v16 = vsel %vm713_vm11, %v718_v15, 0.0  ;;  %707 = vst [vmem:[#allocation4 + $0x38] sm:$0xff] %v697_v44  ;;  %v689_v56 = vadd.f32 %v688_v62, %v599_v60  ;;  %v721_v2 = vsub.f32 %v697_v44, %v1165_v1  ;;  %v786_v59 = vadd.f32 %v785_v22, %v779_v46 }
 0x202   :  { %v741_v49 = vadd.f32 %v740_v57, %v734_v52  ;;  %v736_v6 = vmul.f32 %v728_v16, %v728_v16 }
 0x203   :  { %705 = vst [vmem:[#allocation4 + $0x28] sm:$0xff] %v689_v56  ;;  %v719_v5 = vsub.f32 %v689_v56, %v1177_v4  ;;  %v731_v54 = vsel %vm713_vm11, %v721_v2, 0.0 }
 0x204   :  { %v742_v13 = vadd.f32 %v741_v49, %v735_v58  ;;  %v739_v4 = vmul.f32 %v731_v54, %v731_v54 }
 0x205   :  { %v729_v23 = vsel %vm713_vm11, %v719_v5, 0.0 }
 0x206   :  { %v743_v29 = vadd.f32 %v742_v13, %v736_v6  ;;  %v737_v30 = vmul.f32 %v729_v23, %v729_v23 }
 0x208   :  { %v744_v19 = vadd.f32 %v743_v29, %v737_v30 }
 0x20a   :  { %v745_v20 = vadd.f32 %v744_v19, %v738_v55 }
 0x20c   :  { %v746_v24 = vadd.f32 %v745_v20, %v739_v4 }
 0x20e   :  { %747 = vadd.xlane.f32.xlu0 %v746_v24 }
 0x212   :  { %787 = vadd.xlane.f32.xlu0 %v786_v59 }
 0x213   :  { %1057 = shalt.err (!%p1054_p4)
}
 0x214   :  { %s1113_s8 = smov 128   ;;  %s1114_s9 = smov 8  }
 0x215   :  { %829 = dma.vmem_to_hbm [thread:$0]  %s824_s3, 1024, %s1468_s6, [#allocation5], %s1113_s8, %s1113_s8, %s1114_s9  }
 0x216   :  { %s1115_s12 = smov [#allocation2]  }
 0x217   :  { %s814_s13 = sshll.u32 %s1115_s12, 4  ;;  %s815_s13 = int_to_ptr.vmem [resolvable:$true] %s814_s13 }
 0x218   :  { %s1066_s14 = scalar_lea.vmem %s815_s13, 16  ;;  %s1070_s15 = scalar_lea.vmem %s815_s13, 32 }
 0x219   :  { %p1067_p5 = scmp.ne.s32.totalorder %s815_s13, %s1066_s14  ;;  %p1071_p6 = scmp.lt.s32.totalorder %s815_s13, %s815_s13 }
 0x21a   :  { %p1072_p7 = scmp.lt.s32.totalorder %s1070_s15, %s1066_s14 }
 0x21c   :  { %p1073_p8 = por %p1072_p7, %p1071_p6 }
 0x21e   :  { %p1074_p9 = pnand %p1073_p8, %p1067_p5 }
 0x220   :  { %1077 = shalt.err (!%p1074_p9)
}
 0x221   :  { %817 = dma.vmem_to_hbm [thread:$0]  %s815_s13, 16, %s1467_s5, [#allocation3]   ;;  %v764_v0 = vpop.xlane.xlu1 %763  ;;  %vm796_vm12 = vcmp.eq.s32.totalorder %v1413_v3, 0  ;;  %vm799_vm13 = vcmp.eq.s32.totalorder %v1413_v3, 1  ;;  %vm803_vm14 = vcmp.eq.s32.totalorder %v1413_v3, 2 }
 0x222   :  { %v765_v1 = vrot.slane %v764_v0, 4  ;;  %s1116_s19 = smov [#allocation6]  }
 0x223   :  { %s836_s20 = sshll.u32 %s1116_s19, 4  ;;  %s837_s20 = int_to_ptr.vmem [resolvable:$true] %s836_s20 }
 0x224   :  { %v766_v9 = vadd.f32 %v765_v1, %v764_v0  ;;  %s1086_s1 = scalar_lea.vmem %s837_s20, 16  ;;  %s1090_s4 = scalar_lea.vmem %s837_s20, 32 }
 0x225   :  { %p1087_p10 = scmp.ne.s32.totalorder %s837_s20, %s1086_s1  ;;  %p1091_p11 = scmp.lt.s32.totalorder %s837_s20, %s837_s20 }
 0x226   :  { %v767_v17 = vrot.slane %v766_v9, 2  ;;  %p1092_p12 = scmp.lt.s32.totalorder %s1090_s4, %s1086_s1 }
 0x228   :  { %v768_v28 = vadd.f32 %v767_v17, %v766_v9  ;;  %p1093_p13 = por %p1092_p12, %p1091_p11 }
 0x22a   :  { %v769_v45 = vrot.slane %v768_v28, 1  ;;  %p1094_p0 = pnand %p1093_p13, %p1087_p10 }
 0x22c   :  { %v770_v40 = vadd.f32 %v769_v45, %v768_v28 }
 0x297   :  { %v748_v25 = vpop.xlane.xlu0 %747 }
 0x298   :  { %v749_v53 = vrot.slane %v748_v25, 4 }
 0x29a   :  { %v750_v27 = vadd.f32 %v749_v53, %v748_v25 }
 0x29b   :  { %v788_v31 = vpop.xlane.xlu0 %787 }
 0x29c   :  { %v751_v21 = vrot.slane %v750_v27, 2  ;;  %v789_v32 = vrot.slane %v788_v31, 4 }
 0x29e   :  { %v790_v33 = vadd.f32 %v789_v32, %v788_v31  ;;  %v752_v34 = vadd.f32 %v751_v21, %v750_v27 }
 0x2a0   :  { %v791_v36 = vrot.slane %v790_v33, 2  ;;  %v753_v37 = vrot.slane %v752_v34, 1 }
 0x2a2   :  { %v792_v11 = vadd.f32 %v791_v36, %v790_v33  ;;  %v754_v39 = vadd.f32 %v753_v37, %v752_v34 }
 0x2a4   :  { %1015 = vpush %v754_v39  ;;  %v793_v7 = vrot.slane %v792_v11, 1 }
 0x2a5   :  { %1017 = vpush %v770_v40 }
 0x2a6   :  { %v794_v41 = vadd.f32 %v793_v7, %v792_v11 }
 0x2a8   :  { %1019 = vpush %v794_v41 }
 0x2d5   :  { %s1016_s5 = spop %1015 }
 0x2d6   :  { %v797_v42 = vstv %s1016_s5  ;;  %s1018_s6 = spop %1017 }
 0x2d7   :  { %v798_v18 = vsel %vm796_vm12, %v797_v42, 0.0  ;;  %v800_v26 = vstv %s1018_s6 }
 0x2d8   :  { %v801_v35 = vsel %vm799_vm13, %v800_v26, 0.0 }
 0x2d9   :  { %s1020_s18 = spop %1019  ;;  %v802_v43 = vadd.f32 %v801_v35, %v798_v18 }
 0x2da   :  { %v804_v48 = vstv %s1020_s18 }
 0x2db   :  { %v805_v50 = vsel %vm803_vm14, %v804_v48, 0.0 }
 0x2dc   :  { %v806_v8 = vadd.f32 %v805_v50, %v802_v43 }
 0x2de   :  { %807 = vst [vmem:[#allocation6] sm:$0x1] %v806_v8 }
 0x2df   :  { %1097 = shalt.err (!%p1094_p0)
}
 0x2e0   :  { %839 = dma.vmem_to_hbm [thread:$0]  %s837_s20, 16, %s1469_s7, [#allocation5]  }
 0x2e1   :  { %1106 = dma.done.wait [#allocation3], 16  }
 0x2e2   :  { %1107 = vsyncadd [#allocation3], 4294967280 }
 0x2e3   :  { %1108 = dma.done.wait [#allocation5], 1040  }
 0x2e4   :  { %1109 = vsyncadd [#allocation5], 4294966256 }
 0x2e5   :  { %849 = vsyncpa [#allocation3], 1 }
 0x2e6   :  { %850 = vsyncpa [#allocation5], 1 }

</bundles_post_ra>
